<compile_context>
chip_gen: v7x
topology: tpu7x:2x2x1
jax: 0.10.0
libtpu: 0.0.40
codegen_flags: <defaults>
</compile_context>

<pallas_src>
import functools
import math

import jax
import jax.numpy as jnp
from jax import lax
from jax.experimental import pallas as pl
from jax.experimental.pallas import tpu as pltpu


_NEG_INF = float(-1e30)


def _round_up(x, m):
    return ((x + m - 1) // m) * m


def _vmem_budget_bytes():
    """(tile budget, scoped vmem limit) in bytes, generation-aware."""
    try:
        cap = pltpu.get_tpu_info().vmem_capacity_bytes
    except Exception:
        cap = 64 << 20          # conservative (v7x per-TC VMEM)
    limit = min(int(cap * 0.7), 48 << 20)
    budget = int(limit * 0.6)   # headroom for double-buffering + compiler scratch
    return budget, limit


def _pick_tk(k_pad, m_pad, compute_dtype, budget_bytes, tb_max=256):
    """Largest K tile (multiple of 128, dividing k_pad) fitting the VMEM budget."""
    dsize = jnp.dtype(compute_dtype).itemsize
    # resident f32 attention block (assume double-buffered) for the widest b tile
    fixed = 2 * tb_max * m_pad * 4
    # per-K-column bytes: double-buffered x + w tiles (compute dtype) + f32 out tile
    per_col = 2 * (tb_max * dsize + m_pad * dsize + tb_max * 4)
    avail = max(budget_bytes - fixed, per_col * 128)
    tk_cap = max(128, (avail // per_col) // 128 * 128)
    best = 128
    for cand in range(128, min(k_pad, tk_cap) + 1, 128):
        if k_pad % cand == 0:
            best = cand
    return best


def _mem_kernel(x_ref, w_ref, att_ref, out_ref, *, thres, m_valid):
    """One memory-attention path, K-tiled over a (b, phase, k) grid.

    x_ref   : (TB, TK)      query tile (flattened features, compute dtype)
    w_ref   : (M_pad, TK)   memory tile (compute dtype)
    att_ref : (TB, M_pad)   f32; used as the score accumulator during phase 0,
                            finalized in place (softmax -> hard-shrink -> L1)
    out_ref : (TB, TK)      f32 attention-weighted readout tile (phase 1)
    """
    ph = pl.program_id(1)
    k = pl.program_id(2)
    nk = pl.num_programs(2)
    eps = 1e-12

    @pl.when(ph == 0)
    def _score_phase():
        @pl.when(k == 0)
        def _init():
            att_ref[...] = jnp.zeros_like(att_ref)

        # s += einsum('bk,mk->bm'); contraction expressed directly so no
        # transposed copy of the weight tile is materialized. f32 accumulate.
        att_ref[...] += lax.dot_general(
            x_ref[...], w_ref[...],
            dimension_numbers=(((1,), (1,)), ((), ())),
            preferred_element_type=jnp.float32)

        @pl.when(k == nk - 1)
        def _finalize():
            s = att_ref[...]
            # Mask padded memory slots so they receive zero attention.
            col = lax.broadcasted_iota(jnp.int32, s.shape, 1)
            s = jnp.where(col < m_valid, s, _NEG_INF)

            # softmax over the memory axis; EUP approximate reciprocal is fine
            # here because the exact L1 renormalization below cancels its
            # (uniform) relative error.
            s = s - jnp.max(s, axis=1, keepdims=True)
            e = jnp.exp(s)
            p = e * pl.reciprocal(jnp.sum(e, axis=1, keepdims=True), approx=True)

            # hard_shrink_relu(p, lambd=thres) = relu(p - t) * p / (|p - t| + eps)
            shifted = p - thres
            p = jnp.maximum(shifted, 0.0) * p / (jnp.abs(shifted) + eps)

            # F.normalize(p, p=1, dim=1) — exact divide (returned to caller).
            p = p / jnp.maximum(jnp.sum(jnp.abs(p), axis=1, keepdims=True), eps)

            att_ref[...] = p

    @pl.when(ph == 1)
    def _readout_phase():
        # out[:, k_tile] = einsum('bm,mk->bk') for this K tile (reverse K walk).
        out_ref[...] = jnp.dot(
            att_ref[...].astype(w_ref.dtype), w_ref[...],
            preferred_element_type=jnp.float32)


def _node_attend_pallas(x_flat, w_padded, m_valid, k_valid, thres, tk,
                        compute_dtype, vmem_limit_bytes):
    """Tiled memory attention: (B, K) queries vs pre-padded (m_pad, k_pad) memory.

    Returns (att (B, M) f32, out (B, K) f32).
    """
    B = x_flat.shape[0]
    m_pad, k_pad = w_padded.shape

    # Batch tile: packed sublane multiple (16 for bf16, 8 for f32), capped at
    # 256 to fill the 256-wide MXU and minimize re-streaming of the memory
    # matrix (w HBM traffic scales with the number of b tiles).
    sub = 16 if compute_dtype == jnp.bfloat16 else 8
    tb = min(_round_up(B, sub), 256)
    b_pad = _round_up(B, tb)
    nb = b_pad // tb
    nk = k_pad // tk
    # TODO(synk): on v7x, when B is large enough, shrink tb so nb >= 2 and both
    # TensorCores get work on the "parallel" b axis.

    x_p = jnp.zeros((b_pad, k_pad), compute_dtype).at[:B, :k_valid].set(
        x_flat.astype(compute_dtype))

    kernel = functools.partial(_mem_kernel, thres=float(thres), m_valid=m_valid)

    att_p, out_p = pl.pallas_call(
        kernel,
        out_shape=(
            jax.ShapeDtypeStruct((b_pad, m_pad), jnp.float32),
            jax.ShapeDtypeStruct((b_pad, k_pad), jnp.float32),
        ),
        grid_spec=pltpu.PrefetchScalarGridSpec(
            num_scalar_prefetch=0,
            grid=(nb, 2, nk),
            in_specs=[
                # x: walk K tiles in phase 0; park on the last tile in phase 1
                # (x is unused there) so no extra DMA is issued.
                pl.BlockSpec(
                    (tb, tk),
                    lambda b, ph, k: (b, (1 - ph) * k + ph * (nk - 1))),
                # w: phase 0 walks K forward, phase 1 walks K in reverse, so the
                # tile resident at the phase boundary (and at the b-tile
                # boundary) is reused without a new DMA.
                pl.BlockSpec(
                    (m_pad, tk),
                    lambda b, ph, k: (0, (1 - ph) * k + ph * (nk - 1 - k))),
            ],
            out_specs=(
                # Attention weights: one lane-dense (tb, m_pad) block per b
                # tile, resident across both phases (doubles as accumulator).
                pl.BlockSpec((tb, m_pad), lambda b, ph, k: (b, 0)),
                # Readout: parked at the last K block during phase 0, written
                # per K tile (in reverse) in phase 1.
                pl.BlockSpec(
                    (tb, tk),
                    lambda b, ph, k: (b, (1 - ph) * (nk - 1) + ph * (nk - 1 - k))),
            ),
        ),
        compiler_params=pltpu.CompilerParams(
            # b tiles are independent -> shard across TensorCores on multi-TC
            # chips; phase / K-reduction axes must run in order.
            dimension_semantics=("parallel", "arbitrary", "arbitrary"),
            vmem_limit_bytes=int(vmem_limit_bytes)),
    )(x_p, w_padded)

    return att_p[:B, :m_valid], out_p[:B, :k_valid]


def _attend_xla(x, w, thres, eps=1e-12):
    """Pure-XLA memory attention for tiny paths (graph path)."""
    s = jnp.einsum('bk,mk->bm', x, w)
    p = jax.nn.softmax(s, axis=1)
    shifted = p - thres
    p = jnp.maximum(shifted, 0.0) * p / (jnp.abs(shifted) + eps)
    p = p / jnp.maximum(jnp.sum(jnp.abs(p), axis=1, keepdims=True), eps)
    return p, jnp.einsum('bm,mk->bk', p, w)


class MemModulePallas:
    """JAX/Pallas port of MemModule."""

    def __init__(self, mem_num_node, mem_num_graph, node_num, feat_num, key,
                 compute_dtype=jnp.bfloat16):
        k1, k2 = jax.random.split(key)
        stdv_node = 1.0 / math.sqrt(node_num)      # weight_node.size(1) == node_num
        stdv_graph = 1.0 / math.sqrt(feat_num)     # weight_graph.size(1) == feat_num
        self.weight_node = jax.random.uniform(
            k1, (mem_num_node, node_num, feat_num),
            minval=-stdv_node, maxval=stdv_node, dtype=jnp.float32)
        self.weight_graph = jax.random.uniform(
            k2, (mem_num_graph, feat_num),
            minval=-stdv_graph, maxval=stdv_graph, dtype=jnp.float32)
        self.shrink_thres = 0.2 / mem_num_node
        self.shrink_thres_graph = 0.2 / mem_num_graph
        self.compute_dtype = compute_dtype

        # Node-path geometry is fully known at init: pre-flatten, pre-pad and
        # pre-cast the memory matrix ONCE (it is a static parameter) so every
        # forward pass skips the pad/copy of the dominant HBM stream.
        K = node_num * feat_num
        self._node_K = K
        m_pad = _round_up(mem_num_node, 128)   # lane-dense attention store
        k_pad = _round_up(K, 128)
        budget, limit = _vmem_budget_bytes()
        self._vmem_limit = limit
        self._node_tk = _pick_tk(k_pad, m_pad, compute_dtype, budget)
        w_flat = self.weight_node.reshape(mem_num_node, K)
        self._w_node_padded = (
            jnp.zeros((m_pad, k_pad), compute_dtype)
            .at[:mem_num_node, :K].set(w_flat.astype(compute_dtype)))
        # TODO(synk): on v7x an fp8 (e4m3 + per-row scale) copy of the weights
        # for the score phase would halve weight HBM bytes again.

    def __call__(self, node_embed, graph_embed):
        B, N, D = node_embed.shape
        M = self.weight_node.shape[0]

        # --- node path: einsum('bnd,mnd->bm') == (B, N*D) vs (M, N*D) ---
        x_flat = node_embed.reshape(B, N * D)
        att_node, out_node_flat = _node_attend_pallas(
            x_flat, self._w_node_padded, M, self._node_K, self.shrink_thres,
            self._node_tk, self.compute_dtype, self._vmem_limit)
        output_node = out_node_flat.reshape(B, N, D)

        # --- graph path: mem_num_graph x feat_num is tiny; padding to TPU tile
        # granularity plus a second kernel launch would dwarf the work, so it
        # stays in plain XLA (fused for free). ---
        att_graph, output_graph = _attend_xla(
            graph_embed, self.weight_graph, self.shrink_thres_graph)

        return output_node, output_graph, att_node, att_graph


def _reference(module, node_embed, graph_embed):
    """Pure-JAX reference of the PyTorch forward (matmul operands quantized to
    the module's compute dtype, f32 accumulation, matching the kernel)."""
    eps = 1e-12
    cd = module.compute_dtype

    def path(x_flat, w_flat, thres):
        s = jnp.einsum('bk,mk->bm', x_flat.astype(cd), w_flat.astype(cd),
                       preferred_element_type=jnp.float32)
        p = jax.nn.softmax(s, axis=1)
        shifted = p - thres
        p = jnp.maximum(shifted, 0.0) * p / (jnp.abs(shifted) + eps)
        p = p / jnp.maximum(jnp.sum(jnp.abs(p), axis=1, keepdims=True), eps)
        out = jnp.einsum('bm,mk->bk', p.astype(cd), w_flat.astype(cd),
                         preferred_element_type=jnp.float32)
        return p, out

    B, N, D = node_embed.shape
    mn = module.weight_node.shape[0]
    att_n, out_n = path(node_embed.reshape(B, N * D),
                        module.weight_node.reshape(mn, N * D),
                        module.shrink_thres)
    att_g, out_g = _attend_xla(graph_embed, module.weight_graph,
                               module.shrink_thres_graph)
    return out_n.reshape(B, N, D), out_g, att_n, att_g


if __name__ == "__main__":
    key = jax.random.PRNGKey(0)
    k_node, k_graph, k_params = jax.random.split(key, 3)

    batch = 2
    node_num = 16
    feat_num = 32
    mem_num_node = 8
    mem_num_graph = 8

    node_embed = jax.random.normal(k_node, (batch, node_num, feat_num), dtype=jnp.float32)
    graph_embed = jax.random.normal(k_graph, (batch, feat_num), dtype=jnp.float32)

    module = MemModulePallas(mem_num_node, mem_num_graph, node_num, feat_num, k_params)

    outs = module(node_embed, graph_embed)
    outs = jax.block_until_ready(outs)

    refs = _reference(module, node_embed, graph_embed)
    for o, r in zip(outs, refs):
        assert o.shape == r.shape and o.dtype == r.dtype
        assert float(jnp.max(jnp.abs(o - r))) < 2e-3

    print("KERNEL_OK")
</pallas_src>

<mosaic_0001>
module attributes {stable_mosaic.version = 11 : i64} {
  func.func @_mem_kernel(%arg0: i32, %arg1: i32, %arg2: i32, %arg3: memref<16x512xbf16, #tpu.memory_space<vmem>>, %arg4: memref<128x512xbf16, #tpu.memory_space<vmem>>, %arg5: memref<16x128xf32, #tpu.memory_space<vmem>>, %arg6: memref<16x512xf32, #tpu.memory_space<vmem>>) attributes {dimension_semantics = [#tpu.dimension_semantics<parallel>, #tpu.dimension_semantics<arbitrary>, #tpu.dimension_semantics<arbitrary>], iteration_bounds = array<i64: 1, 2, 1>, scalar_prefetch = 0 : i64, scratch_operands = 0 : i64, tpu.core_type = #tpu.core_type<tc>, window_params = [{transform_indices = @transform_0, window_bounds = array<i64: 16, 512>}, {transform_indices = @transform_1, window_bounds = array<i64: 128, 512>}, {transform_indices = @transform_2, window_bounds = array<i64: 16, 128>}, {transform_indices = @transform_3, window_bounds = array<i64: 16, 512>}]} {
    %c0_i32 = arith.constant 0 : i32
    %0 = arith.cmpi eq, %arg1, %c0_i32 : i32
    %1 = arith.extui %0 : i1 to i32
    %c0_i32_0 = arith.constant 0 : i32
    %2 = arith.cmpi ne, %1, %c0_i32_0 : i32
    scf.if %2 {
      %c0_i32_2 = arith.constant 0 : i32
      %6 = arith.cmpi eq, %arg2, %c0_i32_2 : i32
      %7 = arith.extui %6 : i1 to i32
      %c0_i32_3 = arith.constant 0 : i32
      %8 = arith.cmpi ne, %7, %c0_i32_3 : i32
      scf.if %8 {
        %cst_13 = arith.constant 0.000000e+00 : f32
        %18 = vector.broadcast %cst_13 : f32 to vector<16x128xf32>
        %c0_14 = arith.constant 0 : index
        %c0_15 = arith.constant 0 : index
        %19 = vector.load %arg5[%c0_14, %c0_15] : memref<16x128xf32, #tpu.memory_space<vmem>>, vector<16x128xf32>
        tpu.vector_store %arg5[%c0_14, %c0_15], %18 {strides = array<i32>} : memref<16x128xf32, #tpu.memory_space<vmem>>, vector<16x128xf32>,
      } else {
      }
      %c0 = arith.constant 0 : index
      %c0_4 = arith.constant 0 : index
      %9 = vector.load %arg5[%c0, %c0_4] : memref<16x128xf32, #tpu.memory_space<vmem>>, vector<16x128xf32>
      %c0_5 = arith.constant 0 : index
      %c0_6 = arith.constant 0 : index
      %10 = vector.load %arg3[%c0_5, %c0_6] : memref<16x512xbf16, #tpu.memory_space<vmem>>, vector<16x512xbf16>
      %c0_7 = arith.constant 0 : index
      %c0_8 = arith.constant 0 : index
      %11 = vector.load %arg4[%c0_7, %c0_8] : memref<128x512xbf16, #tpu.memory_space<vmem>>, vector<128x512xbf16>
      %cst = arith.constant dense<0.000000e+00> : vector<16x128xf32>
      %12 = tpu.matmul %10, %11, %cst {dimension_numbers = #tpu.dot_dimension_numbers<[1], [1], [0], [0], [0, 0, 1, 0], [], []>} : vector<16x512xbf16>, vector<128x512xbf16>, vector<16x128xf32> -> vector<16x128xf32>
      %13 = arith.addf %9, %12 : vector<16x128xf32>
      %c0_9 = arith.constant 0 : index
      %c0_10 = arith.constant 0 : index
      %14 = vector.load %arg5[%c0_9, %c0_10] : memref<16x128xf32, #tpu.memory_space<vmem>>, vector<16x128xf32>
      tpu.vector_store %arg5[%c0_9, %c0_10], %13 {strides = array<i32>} : memref<16x128xf32, #tpu.memory_space<vmem>>, vector<16x128xf32>,
      %c0_i32_11 = arith.constant 0 : i32
      %15 = arith.cmpi eq, %arg2, %c0_i32_11 : i32
      %16 = arith.extui %15 : i1 to i32
      %c0_i32_12 = arith.constant 0 : i32
      %17 = arith.cmpi ne, %16, %c0_i32_12 : i32
      scf.if %17 {
        %c0_13 = arith.constant 0 : index
        %c0_14 = arith.constant 0 : index
        %18 = vector.load %arg5[%c0_13, %c0_14] : memref<16x128xf32, #tpu.memory_space<vmem>>, vector<16x128xf32>
        %19 = tpu.iota {dimensions = array<i32: 1>} : vector<16x128xi32>
        %c8_i32 = arith.constant 8 : i32
        %20 = vector.broadcast %c8_i32 : i32 to vector<16x128xi32>
        %21 = arith.cmpi slt, %19, %20 : vector<16x128xi32>
        %cst_15 = arith.constant -1.000000e+30 : f32
        %22 = vector.broadcast %cst_15 : f32 to vector<16x128xf32>
        %23 = arith.select %21, %18, %22 : vector<16x128xi1>, vector<16x128xf32>
        %cst_16 = arith.constant dense<0xFF800000> : vector<16xf32>
        %24 = vector.multi_reduction <maximumf>, %23, %cst_16 [1] : vector<16x128xf32> to vector<16xf32>
        %25 = vector.shape_cast %24 : vector<16xf32> to vector<16x1xf32>
        %26 = vector.broadcast %25 : vector<16x1xf32> to vector<16x128xf32>
        %27 = arith.subf %23, %26 : vector<16x128xf32>
        %28 = math.exp %27 : vector<16x128xf32>
        %cst_17 = arith.constant dense<0.000000e+00> : vector<16xf32>
        %29 = vector.multi_reduction <add>, %28, %cst_17 [1] : vector<16x128xf32> to vector<16xf32>
        %30 = vector.shape_cast %29 : vector<16xf32> to vector<16x1xf32>
        %31 = tpu.reciprocal %30 {approx = true} : vector<16x1xf32> -> vector<16x1xf32>
        %32 = vector.broadcast %31 : vector<16x1xf32> to vector<16x128xf32>
        %33 = arith.mulf %28, %32 : vector<16x128xf32>
        %cst_18 = arith.constant 2.500000e-02 : f32
        %34 = vector.broadcast %cst_18 : f32 to vector<16x128xf32>
        %35 = arith.subf %33, %34 : vector<16x128xf32>
        %cst_19 = arith.constant 0.000000e+00 : f32
        %36 = vector.broadcast %cst_19 : f32 to vector<16x128xf32>
        %37 = arith.maximumf %35, %36 : vector<16x128xf32>
        %38 = arith.mulf %37, %33 : vector<16x128xf32>
        %39 = math.absf %35 : vector<16x128xf32>
        %cst_20 = arith.constant 9.99999996E-13 : f32
        %40 = vector.broadcast %cst_20 : f32 to vector<16x128xf32>
        %41 = arith.addf %39, %40 : vector<16x128xf32>
        %42 = arith.divf %38, %41 : vector<16x128xf32>
        %43 = math.absf %42 : vector<16x128xf32>
        %cst_21 = arith.constant dense<0.000000e+00> : vector<16xf32>
        %44 = vector.multi_reduction <add>, %43, %cst_21 [1] : vector<16x128xf32> to vector<16xf32>
        %45 = vector.shape_cast %44 : vector<16xf32> to vector<16x1xf32>
        %cst_22 = arith.constant 9.99999996E-13 : f32
        %46 = vector.broadcast %cst_22 : f32 to vector<16x1xf32>
        %47 = arith.maximumf %45, %46 : vector<16x1xf32>
        %48 = vector.broadcast %47 : vector<16x1xf32> to vector<16x128xf32>
        %49 = arith.divf %42, %48 : vector<16x128xf32>
        %c0_23 = arith.constant 0 : index
        %c0_24 = arith.constant 0 : index
        %50 = vector.load %arg5[%c0_23, %c0_24] : memref<16x128xf32, #tpu.memory_space<vmem>>, vector<16x128xf32>
        tpu.vector_store %arg5[%c0_23, %c0_24], %49 {strides = array<i32>} : memref<16x128xf32, #tpu.memory_space<vmem>>, vector<16x128xf32>,
      } else {
      }
    } else {
    }
    %c1_i32 = arith.constant 1 : i32
    %3 = arith.cmpi eq, %arg1, %c1_i32 : i32
    %4 = arith.extui %3 : i1 to i32
    %c0_i32_1 = arith.constant 0 : i32
    %5 = arith.cmpi ne, %4, %c0_i32_1 : i32
    scf.if %5 {
      %c0 = arith.constant 0 : index
      %c0_2 = arith.constant 0 : index
      %6 = vector.load %arg5[%c0, %c0_2] : memref<16x128xf32, #tpu.memory_space<vmem>>, vector<16x128xf32>
      %7 = arith.truncf %6 : vector<16x128xf32> to vector<16x128xbf16>
      %c0_3 = arith.constant 0 : index
      %c0_4 = arith.constant 0 : index
      %8 = vector.load %arg4[%c0_3, %c0_4] : memref<128x512xbf16, #tpu.memory_space<vmem>>, vector<128x512xbf16>
      %cst = arith.constant dense<0.000000e+00> : vector<16x512xf32>
      %9 = tpu.matmul %7, %8, %cst {dimension_numbers = #tpu.dot_dimension_numbers<[1], [0], [0], [1], [0, 0, 1, 1], [], []>} : vector<16x128xbf16>, vector<128x512xbf16>, vector<16x512xf32> -> vector<16x512xf32>
      %c0_5 = arith.constant 0 : index
      %c0_6 = arith.constant 0 : index
      %10 = vector.load %arg6[%c0_5, %c0_6] : memref<16x512xf32, #tpu.memory_space<vmem>>, vector<16x512xf32>
      tpu.vector_store %arg6[%c0_5, %c0_6], %9 {strides = array<i32>} : memref<16x512xf32, #tpu.memory_space<vmem>>, vector<16x512xf32>,
    } else {
    }
    return
  }
  func.func @transform_0(%arg0: i32, %arg1: i32, %arg2: i32) -> (i32, i32) {
    %c1_i32 = arith.constant 1 : i32
    %0 = arith.subi %c1_i32, %arg1 : i32
    %1 = arith.muli %0, %arg2 : i32
    %c0_i32 = arith.constant 0 : i32
    %2 = arith.muli %arg1, %c0_i32 : i32
    %3 = arith.addi %1, %2 : i32
    %c0_i32_0 = arith.constant 0 : i32
    return %arg0, %3 : i32, i32
  }
  func.func @transform_1(%arg0: i32, %arg1: i32, %arg2: i32) -> (i32, i32) {
    %c1_i32 = arith.constant 1 : i32
    %0 = arith.subi %c1_i32, %arg1 : i32
    %1 = arith.muli %0, %arg2 : i32
    %c0_i32 = arith.constant 0 : i32
    %2 = arith.subi %c0_i32, %arg2 : i32
    %3 = arith.muli %arg1, %2 : i32
    %4 = arith.addi %1, %3 : i32
    %c0_i32_0 = arith.constant 0 : i32
    %c0_i32_1 = arith.constant 0 : i32
    return %c0_i32_0, %4 : i32, i32
  }
  func.func @transform_2(%arg0: i32, %arg1: i32, %arg2: i32) -> (i32, i32) {
    %c0_i32 = arith.constant 0 : i32
    %c0_i32_0 = arith.constant 0 : i32
    return %arg0, %c0_i32 : i32, i32
  }
  func.func @transform_3(%arg0: i32, %arg1: i32, %arg2: i32) -> (i32, i32) {
    %c1_i32 = arith.constant 1 : i32
    %0 = arith.subi %c1_i32, %arg1 : i32
    %c0_i32 = arith.constant 0 : i32
    %1 = arith.muli %0, %c0_i32 : i32
    %c0_i32_0 = arith.constant 0 : i32
    %2 = arith.subi %c0_i32_0, %arg2 : i32
    %3 = arith.muli %arg1, %2 : i32
    %4 = arith.addi %1, %3 : i32
    %c0_i32_1 = arith.constant 0 : i32
    return %arg0, %4 : i32, i32
  }
}

</mosaic_0001>

<bundles_post_ra>
// kernel: tpu_custom_call.1
= control target key start
LH: loop header
LB: loop body
LE: loop exit
PB: predicated region body
PF: predicated region fallthrough
CT: control target
= control target key end

     0   :  { %9 = vsyncpa [#allocation3], 0  ;;  %s1726_s0 = inlined_call_operand.hbm [shape: bf16[16,512], index: 0, kind: input, shape index: {}]   ;;  %s1727_s1 = inlined_call_operand.hbm [shape: bf16[128,512], index: 1, kind: input, shape index: {}]   ;;  %s1728_s2 = inlined_call_operand.hbm [shape: f32[16,128], index: 2, kind: output, shape index: {0}]   ;;  %s1729_s3 = inlined_call_operand.hbm [shape: f32[16,512], index: 3, kind: output, shape index: {1}]  }
   0x1   :  { %11 = vsyncpa [#allocation3 + $0x1], 0 }
   0x2   :  { %12 = vsyncpa [#allocation6], 0 }
   0x3   :  { %14 = vsyncpa [#allocation6 + $0x1], 0 }
   0x4   :  { %15 = vsyncpa [#allocation4], 0 }
   0x5   :  { %16 = vsyncpa [#allocation9], 0 }
   0x6   :  { %18 = vsyncpa [#allocation9 + $0x1], 0  ;;  %s1584_s12 = smov 0   ;;  %s1586_s13 = smov 0  }
   0x7   :  { %s1588_s14 = smov 0  }
   0x8 LB: > { %s1127_s15 = sadd.s32 4294967295, %s1551_s14   ;;  %s1128_s16 = sadd.s32 4294967294, %s1551_s14   ;;  %s1551_s14 = sphi %s1588_s14, %s24_s14   ;;  %s1547_s13 = sphi %s1586_s13, %s1737_s13   ;;  %s1543_s12 = sphi %s1584_s12, %s1736_s12  }
   0x9   : > { %s39_s17 = sadd.s32 1, %s1547_s13  ;;  %p1241_p2 = scmp.lt.s32.totalorder %s1551_s14, 2 }
   0xa   : > { %p41_p1 = scmp.ge.s32.totalorder %s39_s17, 2  ;;  %p1242_p3 = scmp.eq.s32.totalorder %s1551_s14, 0 }
   0xb   : > { %s1553_s19 = smov [#allocation2]   ;;  %s1405_s23 = scalar_lea.hbm %s1726_s0, 512 }
   0xc   : > { %s1739_s17 = smov (%p41_p1, %s39_s17), 0  ;;  %p1607_p4 = pnand %p1242_p3, %p1241_p2 }
   0xd   : > { %s203_s20 = sshll.u32 %s1553_s19, 4  ;;  %p1406_p6 = scmp.ne.s32.totalorder %s1726_s0, %s1405_s23  ;;  %s204_s20 = int_to_ptr.vmem [resolvable:$true] %s203_s20 }
   0xe   : > { %p1407_p7 = pneg %p1607_p4  ;;  %p1412_p10 = scmp.lt.u32.totalorder %s1405_s23, %s1726_s0 }
  0x10   : > { %p1408_p8 = pnand %p1407_p7, %p1406_p6 }
  0x12   : > { %p1409_p9 = pneg %p1408_p8 }
  0x14   : > { %p1414_p11 = pnand %p1412_p10, %p1409_p9 }
  0x16   : > { %1417 = shalt.err (!%p1414_p11)
}
  0x17   : > { %s1418_s28 = scalar_lea.vmem %s204_s20, 512  ;;  %s1425_s29 = scalar_lea.vmem %s204_s20, 1024 }
  0x18   : > { %p1419_p12 = scmp.ne.s32.totalorder %s204_s20, %s1418_s28  ;;  %p1426_p2 = scmp.lt.s32.totalorder %s204_s20, %s204_s20 }
  0x19   : > { %p1427_p3 = scmp.lt.s32.totalorder %s1425_s29, %s1418_s28 }
  0x1a   : > { %p1421_p13 = pnand %p1419_p12, %p1407_p7 }
  0x1b   : > { %p1428_p0 = por %p1427_p3, %p1426_p2 }
  0x1c   : > { %p1422_p1 = pneg %p1421_p13 }
  0x1e   : > { %p1429_p5 = pnand %p1428_p0, %p1422_p1 }
  0x20   : > { %1432 = shalt.err (!%p1429_p5)
}
  0x21   : > { %s1554_s30 = smov 256   ;;  %s1555_s4 = smov 16  }
  0x22   : > { %1233 = dma.hbm_to_vmem [thread:$0]  (!%p1607_p4), %s1726_s0, 512, %s204_s20, [#allocation3], %s1554_s30, %s1554_s30, %s1555_s4  }
  0x23   : > { %p237_p6 = scmp.lt.s32.totalorder %s1551_s14, 3  ;;  %s1556_s7 = smov [#allocation5]  }
  0x24   : > { %s229_s8 = sshll.u32 %s1556_s7, 4  ;;  %p1731_p8 = scmp.ge.s32.totalorder %s1551_s14, 1  ;;  %s230_s8 = int_to_ptr.vmem [resolvable:$true] %s229_s8 }
  0x25   : > { %s1433_s19 = scalar_lea.hbm %s1727_s1, 4096 }
  0x26   : > { %p1637_p9 = pnand %p1731_p8, %p237_p6  ;;  %p1434_p0 = scmp.ne.s32.totalorder %s1727_s1, %s1433_s19 }
  0x27   : > { %p1440_p11 = scmp.lt.u32.totalorder %s1433_s19, %s1727_s1 }
  0x28   : > { %s1732_s9 = scalar_select %p1637_p9, 1, 0 }
  0x29   : > { %p1436_p5 = pnand %p1434_p0, %p1407_p7 }
  0x2b   : > { %p1437_p10 = pneg %p1436_p5 }
  0x2d   : > { %p1442_p12 = pnand %p1440_p11, %p1437_p10 }
  0x2f   : > { %1445 = shalt.err (!%p1442_p12)
}
  0x30   : > { %s1446_s24 = scalar_lea.vmem %s230_s8, 4096  ;;  %s1453_s25 = scalar_lea.vmem %s230_s8, 8192 }
  0x31   : > { %p1447_p13 = scmp.ne.s32.totalorder %s230_s8, %s1446_s24  ;;  %p1454_p3 = scmp.lt.s32.totalorder %s230_s8, %s230_s8 }
  0x32   : > { %p1455_p6 = scmp.lt.s32.totalorder %s1453_s25, %s1446_s24 }
  0x33   : > { %p1449_p1 = pnand %p1447_p13, %p1407_p7 }
  0x34   : > { %p1456_p8 = por %p1455_p6, %p1454_p3 }
  0x35   : > { %p1450_p2 = pneg %p1449_p1 }
  0x37   : > { %p1457_p9 = pnand %p1456_p8, %p1450_p2 }
  0x39   : > { %1460 = shalt.err (!%p1457_p9)
}
  0x3a   : > { %1236 = dma.hbm_to_vmem [thread:$0]  (!%p1607_p4), %s1727_s1, 4096, %s230_s8, [#allocation6], %s1554_s30, %s1554_s30, %s1555_s4  }
  0x3b   : > { %p1733_p0 = scmp.ne.s32.totalorder %s1732_s9, 0 }
  0x3c   : > { %p1244_p5 = scmp.eq.s32.totalorder (!%p1733_p0), %s1127_s15, 0 }
  0x3d   : > { %241 = sbr.rel (%p1733_p0) target bundleno = 1148 (0x47c), region = 28 }
  0x44   : > { %1526 = dma.done.wait (%p1244_p5), [#allocation3], 512  }
  0x45   : > { %1528 = vsyncadd (%p1244_p5), [#allocation3], 4294966784 }
  0x46   : > { %1530 = dma.done.wait (%p1244_p5), [#allocation6], 4096  }
  0x47   : > { %1532 = vsyncadd (%p1244_p5), [#allocation6], 4294963200  ;;  %p1136_p7 = scmp.ne.s32.totalorder %s1543_s12, 0 }
  0x48   : > { %v1287_v0 = vld [vmem:[#allocation5 + $0x4] ss:$16 sps:$4 sm:$0xff] (!%p1136_p7)   ;;  %v1289_v1 = vld [vmem:[#allocation5 + $0xc] ss:$16 sps:$4 sm:$0xff] (!%p1136_p7)   ;;  %v1291_v2 = vld [vmem:[#allocation5] ss:$16 sps:$4 sm:$0xff] (!%p1136_p7)   ;;  %v619_v36 = vlaneseq (!%p1136_p7) }
  0x49   : > { %303 = sbr.rel (%p1136_p7) target bundleno = 847 (0x34f), region = 40  ;;  %528 = vmatprep.subr.bf16.mxu0 (!%p1136_p7), %v1287_v0  ;;  %v1292_v3 = vld [vmem:[#allocation5 + $0x8] ss:$16 sps:$4 sm:$0xff] (!%p1136_p7)   ;;  %569 = vmatprep.subr.bf16.mxu1 (!%p1136_p7), %v1289_v1  ;;  %v1293_v4 = vld [vmem:[#allocation5 + $0x24] ss:$16 sps:$4 sm:$0xff] (!%p1136_p7)  }
  0x4a   : > { %529 = vmatpush1.bf16.xpose.msra.mxu0 (!%p1136_p7), %v1291_v2  ;;  %570 = vmatpush1.bf16.xpose.msra.mxu1 (!%p1136_p7), %v1292_v3  ;;  %v1295_v5 = vld [vmem:[#allocation5 + $0x2c] ss:$16 sps:$4 sm:$0xff] (!%p1136_p7)   ;;  %v1297_v6 = vld [vmem:[#allocation5 + $0x20] ss:$16 sps:$4 sm:$0xff] (!%p1136_p7)   ;;  %v1298_v7 = vld [vmem:[#allocation5 + $0x28] ss:$16 sps:$4 sm:$0xff] (!%p1136_p7)  }
  0x4b   : > { %530 = vmatprep.subr.bf16.mxu0 (!%p1136_p7), %v1293_v4  ;;  %571 = vmatprep.subr.bf16.mxu1 (!%p1136_p7), %v1295_v5  ;;  %v1299_v8 = vld [vmem:[#allocation5 + $0x44] ss:$16 sps:$4 sm:$0xff] (!%p1136_p7)   ;;  %v1301_v9 = vld [vmem:[#allocation5 + $0x4c] ss:$16 sps:$4 sm:$0xff] (!%p1136_p7)   ;;  %v1303_v10 = vld [vmem:[#allocation5 + $0x40] ss:$16 sps:$4 sm:$0xff] (!%p1136_p7)  }
  0x4c   : > { %v1304_v11 = vld [vmem:[#allocation5 + $0x48] ss:$16 sps:$4 sm:$0xff] (!%p1136_p7)   ;;  %v1305_v12 = vld [vmem:[#allocation5 + $0x64] ss:$16 sps:$4 sm:$0xff] (!%p1136_p7)   ;;  %v1307_v13 = vld [vmem:[#allocation5 + $0x6c] ss:$16 sps:$4 sm:$0xff] (!%p1136_p7)  }
  0x4d   : > { %v1337_v14 = vld [vmem:[#allocation2 + $0x4] ss:$16 sps:$4 sm:$0xff] (!%p1136_p7)   ;;  %v1340_v15 = vld [vmem:[#allocation2 + $0xc] ss:$16 sps:$4 sm:$0xff] (!%p1136_p7)   ;;  %v1309_v16 = vld [vmem:[#allocation5 + $0x60] ss:$16 sps:$4 sm:$0xff] (!%p1136_p7)  }
  0x4e   : > { %v1310_v17 = vld [vmem:[#allocation5 + $0x68] ss:$16 sps:$4 sm:$0xff] (!%p1136_p7)   ;;  %560 = vmatprep.mubr.bf16.mxu0 (!%p1136_p7), %v1337_v14  ;;  %v1311_v18 = vld [vmem:[#allocation5 + $0x84] ss:$16 sps:$4 sm:$0xff] (!%p1136_p7)   ;;  %v1313_v19 = vld [vmem:[#allocation5 + $0x8c] ss:$16 sps:$4 sm:$0xff] (!%p1136_p7)   ;;  %601 = vmatprep.mubr.bf16.mxu1 (!%p1136_p7), %v1340_v15 }
  0x4f   : > { %v1315_v20 = vld [vmem:[#allocation5 + $0x80] ss:$16 sps:$4 sm:$0xff] (!%p1136_p7)   ;;  %v1316_v21 = vld [vmem:[#allocation5 + $0x88] ss:$16 sps:$4 sm:$0xff] (!%p1136_p7)   ;;  %v1317_v22 = vld [vmem:[#allocation5 + $0xa4] ss:$16 sps:$4 sm:$0xff] (!%p1136_p7)  }
  0x50   : > { %v1319_v23 = vld [vmem:[#allocation5 + $0xac] ss:$16 sps:$4 sm:$0xff]   ;;  %v1321_v24 = vld [vmem:[#allocation5 + $0xa0] ss:$16 sps:$4 sm:$0xff]   ;;  %v1322_v25 = vld [vmem:[#allocation5 + $0xa8] ss:$16 sps:$4 sm:$0xff]  }
  0x51   : > { %v1323_v26 = vld [vmem:[#allocation5 + $0xc4] ss:$16 sps:$4 sm:$0xff]   ;;  %v1325_v27 = vld [vmem:[#allocation5 + $0xcc] ss:$16 sps:$4 sm:$0xff]   ;;  %v1327_v28 = vld [vmem:[#allocation5 + $0xc0] ss:$16 sps:$4 sm:$0xff]  }
  0x52   : > { %531 = vmatpush1.bf16.xpose.msra.mxu0 %v1297_v6  ;;  %572 = vmatpush1.bf16.xpose.msra.mxu1 %v1298_v7  ;;  %v1328_v29 = vld [vmem:[#allocation5 + $0xc8] ss:$16 sps:$4 sm:$0xff]   ;;  %v1329_v30 = vld [vmem:[#allocation5 + $0xe4] ss:$16 sps:$4 sm:$0xff]   ;;  %v1331_v31 = vld [vmem:[#allocation5 + $0xec] ss:$16 sps:$4 sm:$0xff]  }
  0x53   : > { %532 = vmatprep.subr.bf16.mxu0 %v1299_v8  ;;  %573 = vmatprep.subr.bf16.mxu1 %v1301_v9  ;;  %v1333_v32 = vld [vmem:[#allocation5 + $0xe0] ss:$16 sps:$4 sm:$0xff]   ;;  %v1334_v33 = vld [vmem:[#allocation5 + $0xe8] ss:$16 sps:$4 sm:$0xff]   ;;  %v620_v37 = vand.u32 127, %v619_v36 }
  0x54   : > { %v1335_v34 = vld [vmem:[#allocation2] ss:$16 sps:$4 sm:$0xff]   ;;  %v1338_v35 = vld [vmem:[#allocation2 + $0x8] ss:$16 sps:$4 sm:$0xff]  }
  0x55   : > { %vm621_vm0 = vcmp.lt.s32.totalorder %v620_v37, 8 }
  0x5a   : > { %533 = vmatpush1.bf16.xpose.msra.mxu0 %v1303_v10  ;;  %574 = vmatpush1.bf16.xpose.msra.mxu1 %v1304_v11 }
  0x5b   : > { %534 = vmatprep.subr.bf16.mxu0 %v1305_v12  ;;  %575 = vmatprep.subr.bf16.mxu1 %v1307_v13 }
  0x62   : > { %535 = vmatpush1.bf16.xpose.msra.mxu0 %v1309_v16  ;;  %576 = vmatpush1.bf16.xpose.msra.mxu1 %v1310_v17 }
  0x63   : > { %536 = vmatprep.subr.bf16.mxu0 %v1311_v18  ;;  %577 = vmatprep.subr.bf16.mxu1 %v1313_v19 }
  0x6a   : > { %537 = vmatpush1.bf16.xpose.msra.mxu0 %v1315_v20  ;;  %578 = vmatpush1.bf16.xpose.msra.mxu1 %v1316_v21 }
  0x6b   : > { %538 = vmatprep.subr.bf16.mxu0 %v1317_v22  ;;  %579 = vmatprep.subr.bf16.mxu1 %v1319_v23 }
  0x72   : > { %539 = vmatpush1.bf16.xpose.msra.mxu0 %v1321_v24  ;;  %580 = vmatpush1.bf16.xpose.msra.mxu1 %v1322_v25 }
  0x73   : > { %540 = vmatprep.subr.bf16.mxu0 %v1323_v26  ;;  %581 = vmatprep.subr.bf16.mxu1 %v1325_v27 }
  0x7a   : > { %541 = vmatpush1.bf16.xpose.msra.mxu0 %v1327_v28  ;;  %582 = vmatpush1.bf16.xpose.msra.mxu1 %v1328_v29 }
  0x7b   : > { %542 = vmatprep.subr.bf16.mxu0 %v1329_v30  ;;  %583 = vmatprep.subr.bf16.mxu1 %v1331_v31 }
  0x82   : > { %543 = vmatpush1.bf16.xpose.msra.mxu0 %v1333_v32  ;;  %584 = vmatpush1.bf16.xpose.msra.mxu1 %v1334_v33 }
  0x89   : > { %561 = vmatmul.mubr.bf16.vlgmr.msra.gmra.mrb[0].mxu0 %v1335_v34  ;;  %602 = vmatmul.mubr.bf16.vlgmr.msra.gmra.mrb[0].mxu1 %v1338_v35 }
 0x15c   : > { %v562_v38 = vpop.f32.mrb[0].mxu0  ;;  %v603_v39 = vpop.f32.mrb[0].mxu1 }
 0x15d   : > { %v604_v40 = vadd.f32 %v603_v39, %v562_v38  ;;  %v564_v41 = vpop.f32.mrb[1].mxu0  ;;  %v605_v42 = vpop.f32.mrb[1].mxu1 }
 0x15e   : > { %v565_v43 = vpop.f32.mrb[2].mxu0  ;;  %v606_v44 = vpop.f32.mrb[2].mxu1 }
 0x15f   : > { %v607_v45 = vadd.f32 %v606_v44, %v565_v43  ;;  %v567_v46 = vpop.f32.mrb[3].mxu0  ;;  %v608_v47 = vpop.f32.mrb[3].mxu1  ;;  %v622_v48 = vsel %vm621_vm0, %v604_v40, -1e+30 }
 0x160   : > { %624 = vmax.xlane.f32.xlu0 %v622_v48 }
 0x161   : > { %v623_v49 = vsel %vm621_vm0, %v607_v45, -1e+30 }
 0x164   : > { %626 = vmax.xlane.f32.xlu0 %v623_v49 }
 0x1ed   : > { %v625_v50 = vpop.xlane.xlu0 %624 }
 0x1ee   : > { %v628_v51 = vsub.f32 %v622_v48, %v625_v50 }
 0x1f0   : > { %v630_v52 = vmul.f32 1.442695, %v628_v51 }
 0x1f1   : > { %v627_v53 = vpop.xlane.xlu0 %626 }
 0x1f2   : > { %1341 = vpow2.f32 %v630_v52  ;;  %v629_v54 = vsub.f32 %v623_v49, %v627_v53 }
 0x1f4   : > { %v632_v55 = vmul.f32 1.442695, %v629_v54 }
 0x1f6   : > { %1343 = vpow2.f32 %v632_v55 }
 0x1fc   : > { %v1342_v56 = vpop.eup %1341 }
 0x1fd   : > { %634 = vadd.xlane.f32.xlu1 %v1342_v56 }
 0x200   : > { %v1344_v57 = vpop.eup %1343 }
 0x201   : > { %636 = vadd.xlane.f32.xlu1 %v1344_v57 }
 0x28a   : > { %v635_v58 = vpop.xlane.xlu1 %634 }
 0x28b   : > { %1345 = vrcp.f32 %v635_v58 }
 0x28e   : > { %v637_v59 = vpop.xlane.xlu1 %636 }
 0x28f   : > { %1347 = vrcp.f32 %v637_v59 }
 0x295   : > { %v1346_v60 = vpop.eup %1345 }
 0x296   : > { %v640_v61 = vmul.f32 %v1346_v60, %v1342_v56 }
 0x298   : > { %v1173_v62 = vadd.f32 -0.025, %v640_v61 }
 0x299   : > { %v1348_v63 = vpop.eup %1347 }
 0x29a   : > { %v648_v0 = vand.u32 2147483647, %v1173_v62  ;;  %v641_v1 = vmul.f32 %v1348_v63, %v1344_v57  ;;  %v644_v6 = vmax.f32 %v1173_v62, 0.0 }
 0x29c   : > { %v650_v2 = vadd.f32 1e-12, %v648_v0  ;;  %v1174_v3 = vadd.f32 -0.025, %v641_v1  ;;  %v646_v7 = vmul.f32 %v644_v6, %v640_v61 }
 0x29e   : > { %1349 = vrcp.f32 %v650_v2  ;;  %v649_v4 = vand.u32 2147483647, %v1174_v3  ;;  %v645_v8 = vmax.f32 %v1174_v3, 0.0 }
 0x2a0   : > { %v651_v5 = vadd.f32 1e-12, %v649_v4  ;;  %v647_v12 = vmul.f32 %v645_v8, %v641_v1 }
 0x2a2   : > { %1351 = vrcp.f32 %v651_v5 }
 0x2a8   : > { %v1350_v9 = vpop.eup %1349 }
 0x2a9   : > { %v653_v10 = vmul.f32 %v1350_v9, %v646_v7 }
 0x2ab   : > { %v656_v11 = vand.u32 2147483647, %v653_v10 }
 0x2ac   : > { %v1352_v13 = vpop.eup %1351 }
 0x2ad   : > { %658 = vadd.xlane.f32.xlu0 %v656_v11  ;;  %v655_v14 = vmul.f32 %v1352_v13, %v647_v12 }
 0x2af   : > { %v657_v15 = vand.u32 2147483647, %v655_v14 }
 0x2b1   : > { %660 = vadd.xlane.f32.xlu1 %v657_v15 }
 0x33a   : > { %v659_v16 = vpop.xlane.xlu0 %658 }
 0x33b   : > { %v662_v17 = vmax.f32 %v659_v16, 1e-12 }
 0x33d   : > { %1353 = vrcp.f32 %v662_v17 }
 0x33e   : > { %v661_v18 = vpop.xlane.xlu1 %660 }
 0x33f   : > { %v663_v19 = vmax.f32 %v661_v18, 1e-12 }
 0x341   : > { %1355 = vrcp.f32 %v663_v19 }
 0x347   : > { %v1354_v20 = vpop.eup %1353 }
 0x348   : > { %v665_v21 = vmul.f32 %v1354_v20, %v653_v10 }
 0x34a   : > { %668 = vst [vmem:[#allocation7] sm:$0xff] %v665_v21 }
 0x34b   : > { %v1356_v22 = vpop.eup %1355 }
 0x34c   : > { %v667_v23 = vmul.f32 %v1356_v22, %v655_v14 }
 0x34e   : > { %669 = vst [vmem:[#allocation7 + $0x8] sm:$0xff] %v667_v23 }
 0x34f PF: > { %p1175_p4 = scmp.ne.s32.totalorder %s1543_s12, 1 }
 0x350   : > { %v1357_v24 = vld [vmem:[#allocation5 + $0x4] ss:$16 sps:$4 sm:$0xff] (!%p1175_p4)   ;;  %v1359_v25 = vld [vmem:[#allocation5 + $0xc] ss:$16 sps:$4 sm:$0xff] (!%p1175_p4)   ;;  %v1557_v26 = vmov (!%p1175_p4), 0  }
 0x351   : > { %673 = sbr.rel (%p1175_p4) target bundleno = 1098 (0x44a), region = 52  ;;  %901 = vmatprep.mubr.bf16.mxu0 (!%p1175_p4), %v1557_v26  ;;  %944 = vmatprep.mubr.bf16.mxu1 (!%p1175_p4), %v1557_v26  ;;  %v1361_v27 = vld [vmem:[#allocation5] ss:$16 sps:$4 sm:$0xff] (!%p1175_p4)   ;;  %v1362_v28 = vld [vmem:[#allocation5 + $0x8] ss:$16 sps:$4 sm:$0xff] (!%p1175_p4)  }
 0x352   : > { %869 = vmatprep.subr.bf16.mxu0 (!%p1175_p4), %v1357_v24  ;;  %912 = vmatprep.subr.bf16.mxu1 (!%p1175_p4), %v1359_v25  ;;  %v1363_v29 = vld [vmem:[#allocation5 + $0x24] ss:$16 sps:$4 sm:$0xff] (!%p1175_p4)   ;;  %v1365_v30 = vld [vmem:[#allocation5 + $0x2c] ss:$16 sps:$4 sm:$0xff] (!%p1175_p4)   ;;  %v1367_v31 = vld [vmem:[#allocation5 + $0x20] ss:$16 sps:$4 sm:$0xff] (!%p1175_p4)  }
 0x353   : > { %870 = vmatpush1.bf16.msra.mxu0 (!%p1175_p4), %v1361_v27  ;;  %913 = vmatpush1.bf16.msra.mxu1 (!%p1175_p4), %v1362_v28  ;;  %v1368_v32 = vld [vmem:[#allocation5 + $0x28] ss:$16 sps:$4 sm:$0xff] (!%p1175_p4)   ;;  %v1369_v33 = vld [vmem:[#allocation5 + $0x44] ss:$16 sps:$4 sm:$0xff] (!%p1175_p4)   ;;  %v1371_v34 = vld [vmem:[#allocation5 + $0x4c] ss:$16 sps:$4 sm:$0xff] (!%p1175_p4)  }
 0x354   : > { %871 = vmatprep.subr.bf16.mxu0 (!%p1175_p4), %v1363_v29  ;;  %914 = vmatprep.subr.bf16.mxu1 (!%p1175_p4), %v1365_v30  ;;  %v1373_v35 = vld [vmem:[#allocation5 + $0x40] ss:$16 sps:$4 sm:$0xff] (!%p1175_p4)   ;;  %v1374_v36 = vld [vmem:[#allocation5 + $0x48] ss:$16 sps:$4 sm:$0xff] (!%p1175_p4)   ;;  %v1375_v37 = vld [vmem:[#allocation5 + $0x64] ss:$16 sps:$4 sm:$0xff] (!%p1175_p4)  }
 0x355   : > { %v1377_v38 = vld [vmem:[#allocation5 + $0x6c] ss:$16 sps:$4 sm:$0xff] (!%p1175_p4)   ;;  %v1379_v39 = vld [vmem:[#allocation5 + $0x60] ss:$16 sps:$4 sm:$0xff] (!%p1175_p4)   ;;  %v1380_v40 = vld [vmem:[#allocation5 + $0x68] ss:$16 sps:$4 sm:$0xff] (!%p1175_p4)  }
 0x356   : > { %v1381_v41 = vld [vmem:[#allocation5 + $0x84] ss:$16 sps:$4 sm:$0xff] (!%p1175_p4)   ;;  %v1383_v42 = vld [vmem:[#allocation5 + $0x8c] ss:$16 sps:$4 sm:$0xff] (!%p1175_p4)   ;;  %v1385_v43 = vld [vmem:[#allocation5 + $0x80] ss:$16 sps:$4 sm:$0xff] (!%p1175_p4)  }
 0x357   : > { %872 = vmatpush1.bf16.msra.mxu0 (!%p1175_p4), %v1367_v31  ;;  %915 = vmatpush1.bf16.msra.mxu1 (!%p1175_p4), %v1368_v32  ;;  %v1386_v44 = vld [vmem:[#allocation5 + $0x88] ss:$16 sps:$4 sm:$0xff] (!%p1175_p4)   ;;  %v1387_v45 = vld [vmem:[#allocation5 + $0xa4] ss:$16 sps:$4 sm:$0xff] (!%p1175_p4)   ;;  %v1389_v46 = vld [vmem:[#allocation5 + $0xac] ss:$16 sps:$4 sm:$0xff] (!%p1175_p4)  }
 0x358   : > { %873 = vmatprep.subr.bf16.mxu0 %v1369_v33  ;;  %916 = vmatprep.subr.bf16.mxu1 %v1371_v34  ;;  %v1391_v47 = vld [vmem:[#allocation5 + $0xa0] ss:$16 sps:$4 sm:$0xff]   ;;  %v1392_v48 = vld [vmem:[#allocation5 + $0xa8] ss:$16 sps:$4 sm:$0xff]   ;;  %v1393_v49 = vld [vmem:[#allocation5 + $0xc4] ss:$16 sps:$4 sm:$0xff]  }
 0x359   : > { %v1395_v50 = vld [vmem:[#allocation5 + $0xcc] ss:$16 sps:$4 sm:$0xff]   ;;  %v1397_v51 = vld [vmem:[#allocation5 + $0xc0] ss:$16 sps:$4 sm:$0xff]   ;;  %v1398_v52 = vld [vmem:[#allocation5 + $0xc8] ss:$16 sps:$4 sm:$0xff]  }
 0x35a   : > { %v1399_v53 = vld [vmem:[#allocation5 + $0xe4] ss:$16 sps:$4 sm:$0xff]   ;;  %v1401_v54 = vld [vmem:[#allocation5 + $0xec] ss:$16 sps:$4 sm:$0xff]   ;;  %v1403_v55 = vld [vmem:[#allocation5 + $0xe0] ss:$16 sps:$4 sm:$0xff]  }
 0x35b   : > { %874 = vmatpush1.bf16.msra.mxu0 %v1373_v35  ;;  %917 = vmatpush1.bf16.msra.mxu1 %v1374_v36  ;;  %v1404_v56 = vld [vmem:[#allocation5 + $0xe8] ss:$16 sps:$4 sm:$0xff]   ;;  %v674_v57 = vld [vmem:[#allocation7] sm:$0xff] }
 0x35c   : > { %875 = vmatprep.subr.bf16.mxu0 %v1375_v37  ;;  %918 = vmatprep.subr.bf16.mxu1 %v1377_v38  ;;  %v675_v58 = vld [vmem:[#allocation7 + $0x8] sm:$0xff] }
 0x35d   : > { %v676_v59 = vpack.c.bf16 %v675_v58, %v674_v57 }
 0x35f   : > { %876 = vmatpush1.bf16.msra.mxu0 %v1379_v39  ;;  %919 = vmatpush1.bf16.msra.mxu1 %v1380_v40 }
 0x360   : > { %877 = vmatprep.subr.bf16.mxu0 %v1381_v41  ;;  %920 = vmatprep.subr.bf16.mxu1 %v1383_v42 }
 0x363   : > { %878 = vmatpush1.bf16.msra.mxu0 %v1385_v43  ;;  %921 = vmatpush1.bf16.msra.mxu1 %v1386_v44 }
 0x364   : > { %879 = vmatprep.subr.bf16.mxu0 %v1387_v45  ;;  %922 = vmatprep.subr.bf16.mxu1 %v1389_v46 }
 0x367   : > { %880 = vmatpush1.bf16.msra.mxu0 %v1391_v47  ;;  %923 = vmatpush1.bf16.msra.mxu1 %v1392_v48 }
 0x368   : > { %881 = vmatprep.subr.bf16.mxu0 %v1393_v49  ;;  %924 = vmatprep.subr.bf16.mxu1 %v1395_v50 }
 0x36b   : > { %882 = vmatpush1.bf16.msra.mxu0 %v1397_v51  ;;  %925 = vmatpush1.bf16.msra.mxu1 %v1398_v52 }
 0x36c   : > { %883 = vmatprep.subr.bf16.mxu0 %v1399_v53  ;;  %926 = vmatprep.subr.bf16.mxu1 %v1401_v54 }
 0x36f   : > { %884 = vmatpush1.bf16.msra.mxu0 %v1403_v55  ;;  %927 = vmatpush1.bf16.msra.mxu1 %v1404_v56 }
 0x372   : > { %902 = vmatmul.mubr.bf16.vlgmr.msra.gmra.mrb[0].mxu0 %v676_v59  ;;  %945 = vmatmul.mubr.bf16.vlgmr.msra.gmra.mrb[0].mxu1 %v676_v59 }
 0x445   : > { %v903_v60 = vpop.f32.mrb[0].mxu0  ;;  %v946_v61 = vpop.f32.mrb[0].mxu1 }
 0x446   : > { %955 = vst [vmem:[#allocation8] sm:$0xff] %v903_v60  ;;  %957 = vst [vmem:[#allocation8 + $0x10] sm:$0xff] %v946_v61  ;;  %v905_v62 = vpop.f32.mrb[1].mxu0  ;;  %v948_v63 = vpop.f32.mrb[1].mxu1 }
 0x447   : > { %956 = vst [vmem:[#allocation8 + $0x8] sm:$0xff] %v905_v62  ;;  %958 = vst [vmem:[#allocation8 + $0x18] sm:$0xff] %v948_v63  ;;  %v907_v0 = vpop.f32.mrb[2].mxu0  ;;  %v950_v1 = vpop.f32.mrb[2].mxu1 }
 0x448   : > { %959 = vst [vmem:[#allocation8 + $0x20] sm:$0xff] %v907_v0  ;;  %961 = vst [vmem:[#allocation8 + $0x30] sm:$0xff] %v950_v1  ;;  %v909_v2 = vpop.f32.mrb[3].mxu0  ;;  %v952_v3 = vpop.f32.mrb[3].mxu1 }
 0x449   : > { %960 = vst [vmem:[#allocation8 + $0x28] sm:$0xff] %v909_v2  ;;  %962 = vst [vmem:[#allocation8 + $0x38] sm:$0xff] %v952_v3 }
 0x44a PF: > { %p1669_p9 = scmp.eq.s32.totalorder %s1127_s15, 1  ;;  %s1558_s18 = smov [#allocation7]  }
 0x44b   : > { %s977_s28 = sshll.u32 %s1558_s18, 4  ;;  %s978_s28 = int_to_ptr.vmem [resolvable:$true] %s977_s28 }
 0x44c   : > { %s1461_s29 = scalar_lea.vmem %s978_s28, 256  ;;  %p1468_p13 = scmp.lt.s32.totalorder %s978_s28, %s978_s28 }
 0x44d   : > { %p1462_p10 = scmp.ne.s32.totalorder %s978_s28, %s1461_s29  ;;  %p1469_p1 = scmp.lt.s32.totalorder %s1461_s29, %s1461_s29 }
 0x44f   : > { %p1463_p11 = pnand %p1462_p10, %p1669_p9  ;;  %p1470_p2 = por %p1469_p1, %p1468_p13 }
 0x451   : > { %p1464_p12 = pneg %p1463_p11 }
 0x453   : > { %p1471_p3 = pnand %p1470_p2, %p1464_p12 }
 0x455   : > { %1474 = shalt.err (!%p1471_p3)
}
 0x456   : > { %s1475_s15 = scalar_lea.hbm %s1728_s2, 256 }
 0x457   : > { %p1476_p6 = scmp.ne.s32.totalorder %s1728_s2, %s1475_s15  ;;  %p1481_p5 = scmp.lt.u32.totalorder %s1475_s15, %s1728_s2 }
 0x459   : > { %p1477_p8 = pnand %p1476_p6, %p1669_p9 }
 0x45b   : > { %p1478_p0 = pneg %p1477_p8 }
 0x45d   : > { %p1483_p7 = pnand %p1481_p5, %p1478_p0 }
 0x45f   : > { %1486 = shalt.err (!%p1483_p7)
}
 0x460   : > { %s1559_s9 = smov 128   ;;  %s1560_s10 = smov 8  }
 0x461   : > { %1223 = dma.vmem_to_hbm [thread:$0]  (%p1669_p9), %s978_s28, 256, %s1728_s2, [#allocation4], %s1559_s9, %s1559_s9, %s1560_s10  }
 0x462   : > { %s1561_s21 = smov [#allocation8]  }
 0x463   : > { %s998_s22 = sshll.u32 %s1561_s21, 4  ;;  %s999_s22 = int_to_ptr.vmem [resolvable:$true] %s998_s22 }
 0x464   : > { %s1487_s20 = scalar_lea.vmem %s999_s22, 1024  ;;  %s1493_s23 = scalar_lea.vmem %s999_s22, 2048 }
 0x465   : > { %p1488_p4 = scmp.ne.s32.totalorder %s999_s22, %s1487_s20  ;;  %p1494_p12 = scmp.lt.s32.totalorder %s999_s22, %s999_s22 }
 0x466   : > { %p1495_p13 = scmp.lt.s32.totalorder %s1493_s23, %s1487_s20 }
 0x467   : > { %p1489_p10 = pnand %p1488_p4, %p1669_p9 }
 0x468   : > { %p1496_p1 = por %p1495_p13, %p1494_p12 }
 0x469   : > { %p1490_p11 = pneg %p1489_p10 }
 0x46b   : > { %p1497_p2 = pnand %p1496_p1, %p1490_p11 }
 0x46d   : > { %1500 = shalt.err (!%p1497_p2)
}
 0x46e   : > { %s1501_s26 = scalar_lea.hbm %s1729_s3, 1024 }
 0x46f   : > { %p1502_p3 = scmp.ne.s32.totalorder %s1729_s3, %s1501_s26  ;;  %p1507_p0 = scmp.lt.u32.totalorder %s1501_s26, %s1729_s3 }
 0x471   : > { %p1503_p6 = pnand %p1502_p3, %p1669_p9 }
 0x473   : > { %p1504_p8 = pneg %p1503_p6 }
 0x475   : > { %p1509_p5 = pnand %p1507_p0, %p1504_p8 }
 0x477   : > { %1512 = shalt.err (!%p1509_p5)
}
 0x478   : > { %s1562_s30 = smov 512   ;;  %s1563_s4 = smov 32  }
 0x479   : > { %1225 = dma.vmem_to_hbm [thread:$0]  (%p1669_p9), %s999_s22, 1024, %s1729_s3, [#allocation9], %s1562_s30, %s1562_s30, %s1563_s4  }
 0x47a   : > { %1534 = dma.done.wait (%p1669_p9), [#allocation4], 256  }
 0x47b   : > { %1536 = vsyncadd (%p1669_p9), [#allocation4], 4294967040 }
 0x47c PF: > { %p1250_p7 = scmp.eq.s32.totalorder %s1128_s16, 1  ;;  %p1735_p4 = scmp.ge.s32.totalorder %s1551_s14, 2 }
 0x47e   : > { %p1238_p10 = pnand %p1250_p7, %p1735_p4 }
 0x480   : > { %1538 = dma.done.wait (!%p1238_p10), [#allocation9], 1024  }
 0x481   : > { %1540 = vsyncadd (!%p1238_p10), [#allocation9], 4294966272  ;;  %s24_s14 = sadd.s32 1, %s1551_s14   ;;  %s1736_s12 = smov %s1547_s13 }
 0x482   : > { %p21_p11 = scmp.ge.s32.totalorder %s24_s14, 4   ;;  %s1737_s13 = smov %s1739_s17 }
 0x484   :  { %23 = sbr.rel (!%p21_p11) target bundleno = 8 (0x8), region = 112 }
 0x48b   :  { %1023 = vsyncpa [#allocation3], 1 }
 0x48c   :  { %1025 = vsyncpa [#allocation3 + $0x1], 1 }
 0x48d   :  { %1026 = vsyncpa [#allocation6], 1 }
 0x48e   :  { %1028 = vsyncpa [#allocation6 + $0x1], 1 }
 0x48f   :  { %1029 = vsyncpa [#allocation4], 1 }
 0x490   :  { %1031 = vsyncpa [#allocation4 + $0x1], 1 }
 0x491   :  { %1032 = vsyncpa [#allocation9], 1 }
 0x492   :  { %1034 = vsyncpa [#allocation9 + $0x1], 1 }

</bundles_post_ra>
